<compile_context>
chip_gen: v5e
topology: v5e:2x2
jax: 0.10.0
libtpu: 0.0.40
codegen_flags: <defaults>
</compile_context>

<pallas_src>
import jax
import jax.numpy as jnp
from jax.experimental import pallas as pl
from jax.experimental.pallas import tpu as pltpu


# ---------------------------------------------------------------------------
# Kernels
# ---------------------------------------------------------------------------

def _dss_fused_kernel(delta_ref, x_ref, o_ref):
    """Single-pass DSS: the whole (padded) channel row lives in one block."""
    delta = delta_ref[0]                                             # f32 (SMEM)
    x = jnp.maximum(x_ref[...], jnp.zeros((), x_ref.dtype))          # ReLU (VPU)
    x_max = jnp.max(x, axis=-1, keepdims=True)                       # row max (XLU)
    thr = (x_max.astype(jnp.float32) * delta).astype(x.dtype)        # f32 scale
    o_ref[...] = jnp.minimum(x, thr)                                 # suppressor (VPU)


def _dss_rowmax_kernel(x_ref, m_ref):
    """Wide-channel pass 1: running row max of relu(x), accumulated in f32."""
    k = pl.program_id(1)

    @pl.when(k == 0)
    def _():
        m_ref[...] = jnp.zeros_like(m_ref)       # ReLU makes 0 the max identity

    x = jnp.maximum(x_ref[...], jnp.zeros((), x_ref.dtype))
    m_ref[...] = jnp.maximum(
        m_ref[...], jnp.max(x, axis=-1, keepdims=True).astype(jnp.float32))


def _dss_apply_kernel(delta_ref, x_ref, m_ref, o_ref):
    """Wide-channel pass 2: min(relu(x), rowmax * delta)."""
    delta = delta_ref[0]
    x = jnp.maximum(x_ref[...], jnp.zeros((), x_ref.dtype))
    thr = (m_ref[...] * delta).astype(x.dtype)                       # (tb, 1)
    o_ref[...] = jnp.minimum(x, thr)


# ---------------------------------------------------------------------------
# Tiling helpers
# ---------------------------------------------------------------------------

def _sublane_align(itemsize):
    if itemsize >= 4:
        return 8
    if itemsize == 2:
        return 16
    return 32


def _generation_params():
    """(target_block_bytes, vmem_limit_cap) tuned per TPU generation."""
    try:
        kind = jax.devices()[0].device_kind.lower()
    except Exception:  # pragma: no cover - defensive
        kind = ""
    if "v7" in kind:
        # 64 MiB VMEM per TC, ~3.2 TB/s HBM: big blocks amortize per-step
        # overhead; keep the scoped limit well under physical VMEM.
        return 8 << 20, 48 << 20
    if "v6" in kind:
        # 128 MiB physical VMEM, ~1.4 TB/s HBM.
        return 6 << 20, 64 << 20
    if "v5" in kind:
        # ~820 GB/s HBM: 2-4 MiB blocks already hide per-step overhead.
        return 3 << 20, 64 << 20
    return 4 << 20, 48 << 20


def _pick_batch_tile(b, row_bytes, align, target_block_bytes):
    """Largest aligned batch tile giving ~target_block_bytes per (tb, c) block."""
    tb = max(align, (target_block_bytes // row_bytes) // align * align)
    if tb < b:
        return tb
    # Whole batch fits one target-sized block. Give the "parallel" batch axis
    # >= 2 reasonably balanced steps so v7x can shard across both TensorCores
    # and the pipeline can overlap prologue/drain DMA.
    # TODO(synk): evaluate pltpu.CORE_PARALLEL for explicit 2-TC splitting.
    if b > 2 * align and b * row_bytes >= (1 << 20):
        half = -(-(b // 2) // align) * align     # ceil(b/2) rounded up to align
        if align <= half < b:
            return half
    return b


# ---------------------------------------------------------------------------
# Wrappers
# ---------------------------------------------------------------------------

def dss_reference(x, delta):
    """Pure-JAX reference mirroring the PyTorch module (threshold in f32)."""
    x = jnp.maximum(x, jnp.zeros((), x.dtype))
    x_max = jnp.max(x, axis=-1, keepdims=True)
    thr = (x_max.astype(jnp.float32) * jnp.float32(delta)).astype(x.dtype)
    return jnp.minimum(x, thr)


def _dss_two_pass(x_p, delta_arr, align, itemsize, target_block_bytes,
                  vmem_cap, headroom, *, tb=None, tc=None):
    """Channel-tiled two-pass DSS for rows too wide for a single VMEM block."""
    b, c_pad = x_p.shape

    if tb is None:
        tb = min(b, 8 * align)      # modest batch tile; channels carry the volume
    tb = min(int(tb), b)
    if tb < b and tb % align != 0:
        tb = max(align, (tb // align) * align)

    if tc is None:
        tc = (max(1, target_block_bytes // (tb * itemsize)) // 128) * 128
    tc = max(128, (int(tc) // 128) * 128)
    tc = min(tc, pl.cdiv(c_pad, 128) * 128)

    # Pad channels to a multiple of tc so no garbage enters the channel-axis
    # reduction (input blocks past the array edge are undefined).
    c_grid = pl.cdiv(c_pad, tc) * tc
    x_g = x_p if c_grid == c_pad else jnp.pad(x_p, ((0, 0), (0, c_grid - c_pad)))

    block_bytes = tb * tc * itemsize
    vmem_limit = int(min(vmem_cap, max(32 << 20, 4 * block_bytes + headroom)))
    nb, nc = pl.cdiv(b, tb), c_grid // tc

    # Pass 1: per-row running max of relu(x) in f32 (reduction over channels).
    x_max = pl.pallas_call(
        _dss_rowmax_kernel,
        out_shape=jax.ShapeDtypeStruct((b, 1), jnp.float32),
        grid=(nb, nc),
        in_specs=[pl.BlockSpec((tb, tc), lambda i, k: (i, k))],
        out_specs=pl.BlockSpec((tb, 1), lambda i, k: (i, 0)),
        compiler_params=pltpu.CompilerParams(
            dimension_semantics=("parallel", "arbitrary"),
            vmem_limit_bytes=vmem_limit,
        ),
    )(x_g)

    # Pass 2: elementwise suppressor (both axes independent).
    out = pl.pallas_call(
        _dss_apply_kernel,
        out_shape=jax.ShapeDtypeStruct((b, c_grid), x_p.dtype),
        grid=(nb, nc),
        in_specs=[
            pl.BlockSpec(memory_space=pltpu.MemorySpace.SMEM),
            pl.BlockSpec((tb, tc), lambda i, k: (i, k)),
            pl.BlockSpec((tb, 1), lambda i, k: (i, 0)),
        ],
        out_specs=pl.BlockSpec((tb, tc), lambda i, k: (i, k)),
        compiler_params=pltpu.CompilerParams(
            dimension_semantics=("parallel", "parallel"),
            vmem_limit_bytes=vmem_limit,
        ),
    )(delta_arr, x_g, x_max)

    return out if c_grid == c_pad else out[:, :c_pad]


def dss_forward(x, delta, *, tb=None, tc=None, min_pallas_bytes=1 << 20,
                force_two_pass=False):
    """min(relu(x), rowmax(relu(x)) * delta) for x of shape (b, c)."""
    b, c = x.shape
    itemsize = jnp.dtype(x.dtype).itemsize
    total_bytes = b * c * itemsize

    # Tiny problems: launch + pipeline prologue dominates; XLA's fused
    # elementwise+reduce is already at roofline. min_pallas_bytes=0 forces the
    # Pallas path (used by the tests below).
    if total_bytes < min_pallas_bytes and not force_two_pass:
        return dss_reference(x, delta)

    target_block_bytes, vmem_cap = _generation_params()
    headroom = 4 << 20
    block_cap = (vmem_cap - headroom) // 4       # 4 live copies always fit
    align = _sublane_align(itemsize)

    # Lane-dense channels: zero-pad to a multiple of 128 (neutral after ReLU),
    # slice the padding back off at the end. Avoids masked vst.msk stores.
    c_pad = pl.cdiv(c, 128) * 128
    x_p = x if c_pad == c else jnp.pad(x, ((0, 0), (0, c_pad - c)))
    row_bytes = c_pad * itemsize

    # delta as an f32 SMEM scalar: no recompile per delta, f32 threshold math.
    delta_arr = jnp.full((1,), delta, dtype=jnp.float32)

    two_pass = force_two_pass or (align * row_bytes > block_cap)

    if two_pass:
        out = _dss_two_pass(x_p, delta_arr, align, itemsize,
                            min(target_block_bytes, block_cap),
                            vmem_cap, headroom, tb=tb, tc=tc)
    else:
        if tb is None:
            tb = _pick_batch_tile(b, row_bytes, align,
                                  min(target_block_bytes, block_cap))
        tb = min(int(tb), b)
        if tb < b and tb % align != 0:
            tb = max(align, (tb // align) * align)
        # Never exceed the self-consistent per-block VMEM budget.
        max_tb = max(align, (block_cap // row_bytes) // align * align)
        if tb > max_tb:
            tb = min(max_tb, b)

        block_bytes = tb * row_bytes
        vmem_limit = int(min(vmem_cap, max(32 << 20, 4 * block_bytes + headroom)))

        out = pl.pallas_call(
            _dss_fused_kernel,
            out_shape=jax.ShapeDtypeStruct((b, c_pad), x.dtype),
            grid=(pl.cdiv(b, tb),),
            in_specs=[
                pl.BlockSpec(memory_space=pltpu.MemorySpace.SMEM),
                pl.BlockSpec((tb, c_pad), lambda i: (i, 0)),
            ],
            out_specs=pl.BlockSpec((tb, c_pad), lambda i: (i, 0)),
            compiler_params=pltpu.CompilerParams(
                dimension_semantics=("parallel",),
                vmem_limit_bytes=vmem_limit,
            ),
        )(delta_arr, x_p)

    return out if c_pad == c else out[:, :c]


if __name__ == "__main__":
    root_key = jax.random.PRNGKey(0)
    k1, k2, k3, k4, k5 = jax.random.split(root_key, 5)
    delta = 0.6  # the module's hyperparameter

    # 1) Small canonical shape on the fused single-pass path.
    b, c = 8, 128
    x = jax.random.normal(k1, (b, c), dtype=jnp.float32)
    out = jax.block_until_ready(dss_forward(x, delta, min_pallas_bytes=0))
    assert out.shape == (b, c) and out.dtype == x.dtype
    assert jnp.allclose(out, dss_reference(x, delta), atol=1e-6, rtol=1e-6)

    # 2) Non-divisible batch, explicit small tile: cdiv grid + masked partial tile.
    x2 = jax.random.normal(k2, (20, 256), dtype=jnp.float32)
    out2 = jax.block_until_ready(dss_forward(x2, delta, tb=8, min_pallas_bytes=0))
    assert jnp.allclose(out2, dss_reference(x2, delta), atol=1e-6, rtol=1e-6)

    # 3) Channels not a multiple of 128: lane-dense zero-pad + slice back.
    x3 = jax.random.normal(k3, (16, 100), dtype=jnp.float32)
    out3 = jax.block_until_ready(dss_forward(x3, delta, min_pallas_bytes=0))
    assert out3.shape == (16, 100)
    assert jnp.allclose(out3, dss_reference(x3, delta), atol=1e-6, rtol=1e-6)

    # 4) Wide-channel two-pass path (forced at a small size for testing).
    x4 = jax.random.normal(k4, (16, 200), dtype=jnp.float32)
    out4 = jax.block_until_ready(
        dss_forward(x4, delta, tb=8, tc=128, min_pallas_bytes=0,
                    force_two_pass=True))
    assert out4.shape == (16, 200)
    assert jnp.allclose(out4, dss_reference(x4, delta), atol=1e-6, rtol=1e-6)

    # 5) bf16: threshold is computed in f32 inside the kernel.
    x5 = jax.random.normal(k5, (16, 128), dtype=jnp.bfloat16)
    out5 = jax.block_until_ready(dss_forward(x5, delta, min_pallas_bytes=0))
    assert out5.dtype == jnp.bfloat16
    assert jnp.allclose(out5.astype(jnp.float32),
                        dss_reference(x5, delta).astype(jnp.float32),
                        atol=1e-2, rtol=1e-2)

    print("KERNEL_OK")
</pallas_src>

<mosaic_0001>
module attributes {stable_mosaic.version = 11 : i64} {
  func.func @_dss_fused_kernel(%arg0: i32, %arg1: memref<1xf32, #tpu.memory_space<smem>>, %arg2: memref<8x128xf32, #tpu.memory_space<vmem>>, %arg3: memref<8x128xf32, #tpu.memory_space<vmem>>) attributes {dimension_semantics = [#tpu.dimension_semantics<parallel>], iteration_bounds = array<i64: 1>, scalar_prefetch = 0 : i64, scratch_operands = 0 : i64, tpu.core_type = #tpu.core_type<tc>, window_params = [{transform_indices = @transform_0, window_bounds = array<i64: 1>}, {transform_indices = @transform_1, window_bounds = array<i64: 8, 128>}, {transform_indices = @transform_2, window_bounds = array<i64: 8, 128>}]} {
    %c0 = arith.constant 0 : index
    %0 = memref.load %arg1[%c0] : memref<1xf32, #tpu.memory_space<smem>>
    %c0_0 = arith.constant 0 : index
    %c0_1 = arith.constant 0 : index
    %1 = vector.load %arg2[%c0_0, %c0_1] : memref<8x128xf32, #tpu.memory_space<vmem>>, vector<8x128xf32>
    %cst = arith.constant 0.000000e+00 : f32
    %2 = vector.broadcast %cst : f32 to vector<8x128xf32>
    %3 = arith.maximumf %1, %2 : vector<8x128xf32>
    %cst_2 = arith.constant dense<0xFF800000> : vector<8xf32>
    %4 = vector.multi_reduction <maximumf>, %3, %cst_2 [1] : vector<8x128xf32> to vector<8xf32>
    %5 = vector.shape_cast %4 : vector<8xf32> to vector<8x1xf32>
    %6 = vector.broadcast %0 : f32 to vector<8x1xf32>
    %7 = arith.mulf %5, %6 : vector<8x1xf32>
    %8 = vector.broadcast %7 : vector<8x1xf32> to vector<8x128xf32>
    %9 = arith.minimumf %3, %8 : vector<8x128xf32>
    %c0_3 = arith.constant 0 : index
    %c0_4 = arith.constant 0 : index
    %10 = vector.load %arg3[%c0_3, %c0_4] : memref<8x128xf32, #tpu.memory_space<vmem>>, vector<8x128xf32>
    tpu.vector_store %arg3[%c0_3, %c0_4], %9 {strides = array<i32>} : memref<8x128xf32, #tpu.memory_space<vmem>>, vector<8x128xf32>,
    return
  }
  func.func @transform_0(%arg0: i32) -> i32 {
    %c0_i32 = arith.constant 0 : i32
    %c0_i32_0 = arith.constant 0 : i32
    return %c0_i32 : i32
  }
  func.func @transform_1(%arg0: i32) -> (i32, i32) {
    %c0_i32 = arith.constant 0 : i32
    %c0_i32_0 = arith.constant 0 : i32
    return %arg0, %c0_i32 : i32, i32
  }
  func.func @transform_2(%arg0: i32) -> (i32, i32) {
    %c0_i32 = arith.constant 0 : i32
    %c0_i32_0 = arith.constant 0 : i32
    return %arg0, %c0_i32 : i32, i32
  }
}

</mosaic_0001>

<bundles_post_ra>
// kernel: tpu_custom_call.1
= control target key start
LH: loop header
LB: loop body
LE: loop exit
PB: predicated region body
PF: predicated region fallthrough
CT: control target
= control target key end

     0   :  { %8 = vsyncpa [#allocation4], 0  ;;  %s133_s0 = inlined_call_operand.<no memory space> [shape: f32[1], index: 0, kind: input, shape index: {}]   ;;  %s134_s1 = inlined_call_operand.hbm [shape: f32[8,128], index: 1, kind: input, shape index: {}]   ;;  %s135_s2 = inlined_call_operand.hbm [shape: f32[8,128], index: 2, kind: output, shape index: {}]  }
   0x1   :  { %9 = vsyncpa [#allocation5], 0  ;;  %s17_s11 = sshll.u32 %s134_s1, 4  ;;  %s107_s12 = smov [#allocation3]   ;;  %s18_s11 = int_to_ptr.hbm [resolvable:$true] %s17_s11 }
   0x2   :  { %s19_s13 = sshll.u32 %s107_s12, 4  ;;  %s20_s13 = int_to_ptr.vmem [resolvable:$true] %s19_s13 }
   0x3   :  { %22 = dma.hbm_to_vmem [thread:$0]  %s18_s11, 128, %s20_s13, [#allocation4]  }
   0x4   :  { %103 = dma.done.wait [#allocation4], 128  }
   0x5   :  { %104 = vsyncadd [#allocation4], 4294967168  ;;  %v28_v0 = vld [vmem:[#allocation3] sm:$0xff]  ;;  %v32_v2 = vstv %s133_s0  ;;  %s108_s16 = smov [#allocation6]   ;;  %s43_s1 = sshll.u32 %s135_s2, 4  ;;  %s44_s1 = int_to_ptr.hbm [resolvable:$true] %s43_s1 }
   0x6   :  { %v29_v1 = vmax.f32 %v28_v0, 0.0  ;;  %s41_s17 = sshll.u32 %s108_s16, 4  ;;  %s42_s17 = int_to_ptr.vmem [resolvable:$true] %s41_s17 }
   0x8   :  { %30 = vmax.xlane.f32.xlu0 %v29_v1 }
  0x7b   :  { %v31_v3 = vpop.xlane.xlu0 %30 }
  0x7c   :  { %v33_v4 = vmul.f32 %v32_v2, %v31_v3 }
  0x7e   :  { %v34_v5 = vmin.f32 %v29_v1, %v33_v4 }
  0x80   :  { %35 = vst [vmem:[#allocation6] sm:$0xff] %v34_v5 }
  0x81   :  { %46 = dma.vmem_to_hbm [thread:$0]  %s42_s17, 128, %s44_s1, [#allocation5]  }
  0x82   :  { %105 = dma.done.wait [#allocation5], 128  }
  0x83   :  { %106 = vsyncadd [#allocation5], 4294967168 }
  0x84   :  { %51 = vsyncpa [#allocation4], 1 }
  0x85   :  { %52 = vsyncpa [#allocation5], 1 }

</bundles_post_ra>
